<compile_context>
chip_gen: v5e
topology: v5e:2x2
jax: 0.10.0
libtpu: 0.0.40
codegen_flags: <defaults>
</compile_context>

<pallas_src>
import math
import functools

import jax
import jax.numpy as jnp
from jax.experimental import pallas as pl
from jax.experimental.pallas import tpu as pltpu


_VMEM_BUDGET_BYTES = 16 * 1024 * 1024   # budget for the 6 double-buffered big tiles
_MAX_TILE_ROWS = 2048                   # per review: 512 -> 2048 folded rows / block


def _round_up(x, m):
    return ((x + m - 1) // m) * m


def _pe_fold_kernel(sin_tab_ref, cos_tab_ref, sin_ph_ref, cos_ph_ref, o_ref):
    # sin_tab/cos_tab: (TS, KD)  sin/cos(t * scale)   -- same block every step
    # sin_ph/cos_ph:   (1, KD)   sin/cos(B_i)         -- per-block phase row
    # out[t, l] = sin(t*scale[l]) * cos(B_i[l]) + cos(t*scale[l]) * sin(B_i[l])
    #           = sin(t*scale[l] + B_i[l])            (exact trig identity)
    out = sin_tab_ref[...] * cos_ph_ref[...] + cos_tab_ref[...] * sin_ph_ref[...]
    o_ref[...] = out.astype(o_ref.dtype)


@functools.lru_cache(maxsize=None)
def _build_pe_table(d_model: int, max_len: int, dtype=jnp.float32):
    """Build the full (1, max_len, d_model) positional-embedding buffer once."""
    assert d_model % 2 == 0, "d_model must be even (as in the PyTorch module)"
    assert max_len <= (1 << 24), "positions must stay exactly representable in f32"

    # --- lane-dense fold: fold sequence rows into lanes so KD % 128 == 0 -----
    fold = math.lcm(d_model, 128) // d_model
    if fold * d_model > 4096:
        fold = 1            # very awkward d_model: correct, but masked stores
    KD = fold * d_model     # folded lane width (multiple of 128 unless fallback)

    # f32 output -> 8-row sublane granule; bf16 -> 16 (native packed tile).
    sub = 8 if dtype == jnp.float32 else 16

    rows_needed = -(-max_len // fold)
    R0 = _round_up(rows_needed, sub)

    # --- tile rows: as big as the VMEM budget allows (<=2048), but split into
    # >=2 blocks so both v7x TensorCores get work on the "parallel" axis -------
    ts_vmem = max(sub, (_VMEM_BUDGET_BYTES // (6 * KD * 4)) // sub * sub)
    TS = min(_MAX_TILE_ROWS, ts_vmem, R0)
    if R0 > sub and -(-R0 // TS) < 2:
        TS = _round_up(-(-R0 // 2), sub)
    G = -(-R0 // TS)
    R = G * TS              # pad so every output block is full (no ragged stores)

    # --- one-time host/XLA precompute (tiny) ---------------------------------
    # Per-lane frequency / phase; angle(p, c) = p*freq[c] + phase[c] with
    # cos(x) = sin(x + pi/2).  Folded row r, lane l = lo*d_model + c maps to
    # global position p = r*fold + lo, so angle = r*scale[l] + bias[l].
    lane = jnp.arange(KD, dtype=jnp.int32)
    col = lane % d_model
    lane_off = (lane // d_model).astype(jnp.float32)
    pair = (col & ~1).astype(jnp.float32)                        # 2*(col//2)
    freq = jnp.exp(pair * (-math.log(10000.0) / d_model))
    phase = (col & 1).astype(jnp.float32) * (math.pi / 2.0)
    scale = (float(fold) * freq)[None, :]                        # (1, KD); fold is 2^k -> exact
    bias = (lane_off * freq + phase)[None, :]                    # (1, KD)

    # Angle-addition tables: local-row tables (identical for every block) and
    # per-block phase rows B_i = (i*TS)*scale + bias.
    t = jnp.arange(TS, dtype=jnp.float32)[:, None]               # (TS, 1)
    sin_tab = jnp.sin(t * scale)                                 # (TS, KD)
    cos_tab = jnp.cos(t * scale)
    tile_base = (jnp.arange(G, dtype=jnp.float32) * float(TS))[:, None]   # (G, 1)
    ph_angle = tile_base * scale + bias                          # (G, KD)
    sin_ph = jnp.sin(ph_angle)[:, None, :]                       # (G, 1, KD)
    cos_ph = jnp.cos(ph_angle)[:, None, :]

    pe_folded = pl.pallas_call(
        _pe_fold_kernel,
        out_shape=jax.ShapeDtypeStruct((R, KD), dtype),
        grid=(G,),
        in_specs=[
            # Constant block index -> DMA'd once per core, stays VMEM-resident.
            pl.BlockSpec((TS, KD), lambda i: (0, 0)),
            pl.BlockSpec((TS, KD), lambda i: (0, 0)),
            # Genuinely per-step (1, KD) phase rows (the only streamed inputs).
            pl.BlockSpec((None, 1, KD), lambda i: (i, 0, 0)),
            pl.BlockSpec((None, 1, KD), lambda i: (i, 0, 0)),
        ],
        out_specs=pl.BlockSpec((TS, KD), lambda i: (i, 0)),
        compiler_params=pltpu.CompilerParams(
            dimension_semantics=("parallel",),
            vmem_limit_bytes=32 * 1024 * 1024,
        ),
    )(sin_tab, cos_tab, sin_ph, cos_ph)

    # Unfold back to (max_len, d_model); contiguous reshape + one-time slice of
    # the padding rows (layout plumbing only, runs once per (d_model, max_len)).
    pe = pe_folded.reshape(R * fold, d_model)[:max_len]
    return pe[None]                                              # (1, max_len, d_model)


@functools.lru_cache(maxsize=None)
def _sliced_pe(d_model: int, max_len: int, seq_len: int, dtype=jnp.float32):
    """Cached pe[:, :seq_len]: the slice materialises once per distinct seq_len,
    so repeated forwards incur zero HBM traffic (register_buffer semantics)."""
    pe = _build_pe_table(d_model, max_len, dtype)
    if seq_len == max_len:
        return pe
    return pe[:, :seq_len]


def pe_table(d_model, max_len, dtype=jnp.float32):
    """Full cached buffer; consumers inside jit should index this directly so
    XLA fuses the row read into their add (avoids any slice copy)."""
    return _build_pe_table(d_model, max_len, dtype)


def positional_embedding_forward(x, d_model, max_len, dtype=jnp.float32):
    """Equivalent of PositionalEmbedding(d_model, max_len)(x) -> pe[:, :x.shape[1]]."""
    seq_len = x.shape[1]
    assert seq_len <= max_len, "sequence length exceeds max_len"
    return _sliced_pe(d_model, max_len, seq_len, dtype)


class PositionalEmbedding:
    """Thin module-like wrapper mirroring the PyTorch class."""

    def __init__(self, d_model, max_len, dtype=jnp.float32):
        self.d_model, self.max_len, self.dtype = d_model, max_len, dtype
        self.pe = _build_pe_table(d_model, max_len, dtype)   # register_buffer analogue

    def __call__(self, x):
        return _sliced_pe(self.d_model, self.max_len, x.shape[1], self.dtype)


def _reference_pe(d_model, seq_len):
    """Plain-JAX reference reproducing the PyTorch buffer construction."""
    position = jnp.arange(0, seq_len, dtype=jnp.float32)[:, None]
    div_term = jnp.exp(
        jnp.arange(0, d_model, 2, dtype=jnp.float32) * (-math.log(10000.0) / d_model)
    )
    pe = jnp.zeros((seq_len, d_model), jnp.float32)
    pe = pe.at[:, 0::2].set(jnp.sin(position * div_term))
    pe = pe.at[:, 1::2].set(jnp.cos(position * div_term))
    return pe[None]


if __name__ == "__main__":
    # Small shapes consistent with the module: batch=2, seq=8, d_model=32.
    d_model, max_len = 32, 64
    key = jax.random.PRNGKey(0)
    x = jax.random.normal(key, (2, 8, d_model), dtype=jnp.float32)

    out = jax.block_until_ready(positional_embedding_forward(x, d_model, max_len))
    ref = _reference_pe(d_model, x.shape[1])
    assert out.shape == (1, x.shape[1], d_model), out.shape
    assert out.dtype == jnp.float32
    assert jnp.allclose(out, ref, atol=5e-5), "mismatch vs reference"

    # Second call hits the cached buffer (mirrors PyTorch register_buffer).
    out2 = jax.block_until_ready(positional_embedding_forward(x, d_model, max_len))
    assert jnp.array_equal(out, out2)

    # Generalized lane-dense fold: d_model=48 (not a divisor of 128), padded rows.
    x48 = jnp.zeros((2, 8, 48), jnp.float32)
    out48 = jax.block_until_ready(positional_embedding_forward(x48, 48, 40))
    assert jnp.allclose(out48, _reference_pe(48, 8), atol=5e-5), "fold=8 path mismatch"

    # Multi-block grid (>=2 parallel blocks for v7x's two TensorCores).
    mod = PositionalEmbedding(32, 200)
    out200 = jax.block_until_ready(mod(jnp.zeros((1, 200, 32), jnp.float32)))
    assert jnp.allclose(out200, _reference_pe(32, 200), atol=5e-5), "multi-block mismatch"

    # Optional bf16 output path (writeback-bound: halves HBM store bytes).
    out_bf16 = jax.block_until_ready(
        positional_embedding_forward(x, d_model, max_len, dtype=jnp.bfloat16))
    assert out_bf16.dtype == jnp.bfloat16
    assert jnp.allclose(out_bf16.astype(jnp.float32), ref, atol=2e-2)

    print("KERNEL_OK")
</pallas_src>

<mosaic_0001>
module attributes {stable_mosaic.version = 11 : i64} {
  func.func @_pe_fold_kernel(%arg0: i32, %arg1: memref<8x128xf32, #tpu.memory_space<vmem>>, %arg2: memref<8x128xf32, #tpu.memory_space<vmem>>, %arg3: memref<1x1x128xf32, #tpu.memory_space<vmem>>, %arg4: memref<1x1x128xf32, #tpu.memory_space<vmem>>, %arg5: memref<8x128xf32, #tpu.memory_space<vmem>>) attributes {dimension_semantics = [#tpu.dimension_semantics<parallel>], iteration_bounds = array<i64: 2>, scalar_prefetch = 0 : i64, scratch_operands = 0 : i64, tpu.core_type = #tpu.core_type<tc>, window_params = [{pipeline_mode = #tpu.pipeline_mode<synchronous>, transform_indices = @transform_0, window_bounds = array<i64: 8, 128>}, {pipeline_mode = #tpu.pipeline_mode<synchronous>, transform_indices = @transform_1, window_bounds = array<i64: 8, 128>}, {transform_indices = @transform_2, window_bounds = array<i64: 1, 1, 128>}, {transform_indices = @transform_3, window_bounds = array<i64: 1, 1, 128>}, {transform_indices = @transform_4, window_bounds = array<i64: 8, 128>}]} {
    %c0 = arith.constant 0 : index
    %c0_0 = arith.constant 0 : index
    %0 = vector.load %arg1[%c0, %c0_0] : memref<8x128xf32, #tpu.memory_space<vmem>>, vector<8x128xf32>
    %c0_1 = arith.constant 0 : index
    %c0_2 = arith.constant 0 : index
    %c0_3 = arith.constant 0 : index
    %1 = vector.load %arg4[%c0_1, %c0_2, %c0_3] : memref<1x1x128xf32, #tpu.memory_space<vmem>>, vector<1x1x128xf32>
    %2 = vector.shape_cast %1 : vector<1x1x128xf32> to vector<1x128xf32>
    %3 = vector.broadcast %2 : vector<1x128xf32> to vector<8x128xf32>
    %4 = arith.mulf %0, %3 : vector<8x128xf32>
    %c0_4 = arith.constant 0 : index
    %c0_5 = arith.constant 0 : index
    %5 = vector.load %arg2[%c0_4, %c0_5] : memref<8x128xf32, #tpu.memory_space<vmem>>, vector<8x128xf32>
    %c0_6 = arith.constant 0 : index
    %c0_7 = arith.constant 0 : index
    %c0_8 = arith.constant 0 : index
    %6 = vector.load %arg3[%c0_6, %c0_7, %c0_8] : memref<1x1x128xf32, #tpu.memory_space<vmem>>, vector<1x1x128xf32>
    %7 = vector.shape_cast %6 : vector<1x1x128xf32> to vector<1x128xf32>
    %8 = vector.broadcast %7 : vector<1x128xf32> to vector<8x128xf32>
    %9 = arith.mulf %5, %8 : vector<8x128xf32>
    %10 = arith.addf %4, %9 : vector<8x128xf32>
    %c0_9 = arith.constant 0 : index
    %c0_10 = arith.constant 0 : index
    %11 = vector.load %arg5[%c0_9, %c0_10] : memref<8x128xf32, #tpu.memory_space<vmem>>, vector<8x128xf32>
    tpu.vector_store %arg5[%c0_9, %c0_10], %10 {strides = array<i32>} : memref<8x128xf32, #tpu.memory_space<vmem>>, vector<8x128xf32>,
    return
  }
  func.func @transform_0(%arg0: i32) -> (i32, i32) {
    %c0_i32 = arith.constant 0 : i32
    %c0_i32_0 = arith.constant 0 : i32
    %c0_i32_1 = arith.constant 0 : i32
    return %c0_i32, %c0_i32_0 : i32, i32
  }
  func.func @transform_1(%arg0: i32) -> (i32, i32) {
    %c0_i32 = arith.constant 0 : i32
    %c0_i32_0 = arith.constant 0 : i32
    %c0_i32_1 = arith.constant 0 : i32
    return %c0_i32, %c0_i32_0 : i32, i32
  }
  func.func @transform_2(%arg0: i32) -> (i32, i32, i32) {
    %c0_i32 = arith.constant 0 : i32
    %c0_i32_0 = arith.constant 0 : i32
    %c0_i32_1 = arith.constant 0 : i32
    return %arg0, %c0_i32, %c0_i32_0 : i32, i32, i32
  }
  func.func @transform_3(%arg0: i32) -> (i32, i32, i32) {
    %c0_i32 = arith.constant 0 : i32
    %c0_i32_0 = arith.constant 0 : i32
    %c0_i32_1 = arith.constant 0 : i32
    return %arg0, %c0_i32, %c0_i32_0 : i32, i32, i32
  }
  func.func @transform_4(%arg0: i32) -> (i32, i32) {
    %c0_i32 = arith.constant 0 : i32
    %c0_i32_0 = arith.constant 0 : i32
    return %arg0, %c0_i32 : i32, i32
  }
}

</mosaic_0001>

<bundles_post_ra>
// kernel: tpu_custom_call.1
= control target key start
LH: loop header
LB: loop body
LE: loop exit
PB: predicated region body
PF: predicated region fallthrough
CT: control target
= control target key end

     0   :  { %9 = vsyncpa [#allocation3], 0  ;;  %s803_s0 = inlined_call_operand.hbm [shape: f32[8,128], index: 0, kind: input, shape index: {}]   ;;  %s804_s1 = inlined_call_operand.hbm [shape: f32[8,128], index: 1, kind: input, shape index: {}]   ;;  %s805_s2 = inlined_call_operand.hbm [shape: f32[2,1,128], index: 2, kind: input, shape index: {}]   ;;  %s806_s3 = inlined_call_operand.vmem [shape: f32[2,1,128], index: 3, kind: input, shape index: {}]   ;;  %s807_s4 = inlined_call_operand.hbm [shape: f32[16,128], index: 4, kind: output, shape index: {}]  }
   0x1   :  { %10 = vsyncpa [#allocation6], 0 }
   0x2   :  { %11 = vsyncpa [#allocation4], 0 }
   0x3   :  { %13 = vsyncpa [#allocation4 + $0x1], 0  ;;  %s651_s15 = smov 0   ;;  %s653_s16 = smov 0  }
   0x4   :  { %s655_s17 = smov 0   ;;  %s657_s18 = smov 0  }
   0x5 LB: > { %s672_s19 = sadd.s32 4294967295, %s622_s18   ;;  %s376_s20 = sadd.s32 4294967294, %s622_s18   ;;  %s622_s18 = sphi %s657_s18, %s817_s18   ;;  %s618_s17 = sphi %s655_s17, %s816_s17   ;;  %s614_s16 = sphi %s653_s16, %s815_s16   ;;  %s610_s15 = sphi %s651_s15, %s814_s15  }
   0x6   : > { %p81_p0 = scmp.ne.s32.totalorder %s614_s16, %s610_s15  ;;  %p82_p1 = scmp.eq.s32.totalorder %s672_s19, 0 }
   0x7   : > { %p131_p2 = scmp.eq.s32.totalorder %s672_s19, 1  ;;  %p137_p3 = scmp.eq.s32.totalorder %s376_s20, 1 }
   0x8   : > { %p681_p4 = por %p82_p1, %p81_p0  ;;  %p377_p5 = scmp.ge.s32.totalorder %s622_s18, 1 }
   0x9   : > { %p686_p6 = por %p137_p3, %p81_p0  ;;  %p144_p7 = scmp.lt.s32.totalorder %s622_s18, 3 }
   0xa   : > { %s156_s25 = sshll.u32 %s803_s0, 4  ;;  %s624_s27 = smov [#allocation2]   ;;  %s157_s25 = int_to_ptr.hbm [resolvable:$true] %s156_s25 }
   0xb   : > { %p694_p8 = pnand %p377_p5, %p144_p7  ;;  %s158_s28 = sshll.u32 %s624_s27, 4  ;;  %s159_s28 = int_to_ptr.vmem [resolvable:$true] %s158_s28 }
   0xc   : > { %s168_s5 = sshll.u32 %s804_s1, 4  ;;  %s625_s6 = smov [#allocation5]   ;;  %s169_s5 = int_to_ptr.hbm [resolvable:$true] %s168_s5 }
   0xd   : > { %p401_p10 = pneg %p694_p8  ;;  %s170_s7 = sshll.u32 %s625_s6, 4  ;;  %s171_s7 = int_to_ptr.vmem [resolvable:$true] %s170_s7 }
   0xe   : > { %s707_s8 = sadd.s32 1, %s622_s18   ;;  %s68_s9 = sadd.s32 1, %s618_s17 }
   0xf   : > { %p402_p11 = pnand %p401_p10, %p82_p1  ;;  %s65_s10 = ssub.s32 %s622_s18, %s707_s8 }
  0x10   : > { %p75_p12 = scmp.ne.s32.totalorder %s618_s17, %s614_s16  ;;  %p66_p13 = scmp.eq.s32.totalorder %s65_s10, 0 }
  0x11   : > { %404 = dma.hbm_to_vmem [thread:$0]  (!%p402_p11), %s157_s25, 128, %s159_s28, [#allocation3]  }
  0x12   : > { %407 = dma.hbm_to_vmem [thread:$0]  (!%p402_p11), %s169_s5, 128, %s171_s7, [#allocation6]  }
  0x13   : > { %p76_p0 = scmp.eq.s32.totalorder %s622_s18, 0  ;;  %p717_p3 = por %p131_p2, %p75_p12 }
  0x14   : > { %s722_s12 = scalar_select %p66_p13, %s618_s17, %s68_s9  }
  0x15   : > { %p77_p5 = por %p76_p0, %p75_p12  ;;  %p418_p7 = scmp.lt.s32.totalorder %s622_s18, 2 }
  0x16   : > { %s181_s13 = sand.u32 1, %s622_s18   ;;  %s183_s14 = sand.u32 1, %s618_s17  }
  0x17   : > { %s187_s24 = scalar_lea.hbm %s805_s2, %s622_s18  ;;  %s184_s27 = scalar_lea.vmem [#allocation7], %s183_s14 }
  0x18   : > { %s189_s25 = sshll.u32 %s187_s24, 4  ;;  %s191_s28 = sshll.u32 %s184_s27, 4  ;;  %s190_s25 = int_to_ptr.hbm [resolvable:$true] %s189_s25  ;;  %s192_s28 = int_to_ptr.vmem [resolvable:$true] %s191_s28 }
  0x19   : > { %p731_p10 = pnand %p418_p7, %p77_p5  ;;  %s182_s30 = scalar_lea.sflag [#allocation3], %s181_s13 }
  0x1a   : > { %s518_s5 = sshra.s32 %s190_s25, 4  ;;  %s525_s10 = scalar_lea.hbm %s805_s2, 2  ;;  %s519_s5 = int_to_ptr.hbm [resolvable:$true] %s518_s5 }
  0x1b   : > { %s520_s6 = scalar_lea.hbm %s519_s5, 1  ;;  %p522_p11 = pneg %p731_p10 }
  0x1c   : > { %p521_p2 = scmp.ne.s32.totalorder %s519_s5, %s520_s6  ;;  %p526_p0 = scmp.lt.s32.totalorder %s519_s5, %s805_s2 }
  0x1d   : > { %p527_p5 = scmp.lt.s32.totalorder %s525_s10, %s520_s6 }
  0x1e   : > { %p523_p12 = pnand %p522_p11, %p521_p2 }
  0x1f   : > { %p528_p7 = por %p527_p5, %p526_p0 }
  0x20   : > { %p524_p13 = pneg %p523_p12 }
  0x22   : > { %p529_p9 = pnand %p528_p7, %p524_p13 }
  0x24   : > { %532 = shalt.err (!%p529_p9)
}
  0x25   : > { %411 = dma.hbm_to_vmem [thread:$0]  (!%p731_p10), %s190_s25, 16, %s192_s28, %s182_s30  }
  0x26   : > { %206 = sbr.rel (%p694_p8) target bundleno = 66 (0x42), region = 36 }
  0x2b   : > { %593 = dma.done.wait (%p82_p1), [#allocation3], 128  }
  0x2c   : > { %595 = vsyncadd (%p82_p1), [#allocation3], 4294967168 }
  0x2d   : > { %597 = dma.done.wait (%p82_p1), [#allocation6], 128  }
  0x2e   : > { %599 = vsyncadd (%p82_p1), [#allocation6], 4294967168  ;;  %s218_s13 = sand.u32 1, %s672_s19   ;;  %s757_s23 = sand.u32 1, %s614_s16  }
  0x2f   : > { %s219_s26 = scalar_lea.sflag [#allocation3], %s218_s13  ;;  %s221_s24 = scalar_lea.vmem [#allocation7], %s757_s23 }
  0x30   : > { %601 = dma.done.wait (%p681_p4), %s219_s26, 16  }
  0x31   : > { %603 = vsyncadd (%p681_p4), %s219_s26, 4294967280  ;;  %p249_p8 = scmp.lt.s32.totalorder %s672_s19, 1  ;;  %s384_s27 = sshll.u32 %s757_s23, 3  ;;  %v252_v0 = vld [vmem:[#allocation2] sm:$0xff]  ;;  %v258_v2 = vld [vmem:[#allocation5] sm:$0xff] }
  0x32   : > { %s386_s28 = sshll.u32 %s672_s19, 3  ;;  %v457_v3 = vld [vmem:[%s221_s24] ss:$0 sm:$0xff]  ;;  %s248_s21 = scalar_lea.vmem [#allocation8], %s384_s27 }
  0x33   : > { %s250_s25 = scalar_select %p249_p8, %s672_s19, 1  ;;  %v263_v5 = vmul.f32 %v457_v3, %v258_v2 }
  0x34   : > { %s277_s9 = scalar_lea.hbm %s807_s4, %s386_s28  ;;  %s279_s10 = sshll.u32 %s248_s21, 4  ;;  %s280_s10 = int_to_ptr.vmem [resolvable:$true] %s279_s10 }
  0x35   : > { %s251_s5 = scalar_lea.vmem %s806_s3, %s250_s25  ;;  %s281_s14 = sshll.u32 %s277_s9, 4  ;;  %s282_s14 = int_to_ptr.hbm [resolvable:$true] %s281_s14 }
  0x36   : > { %v456_v1 = vld [vmem:[%s251_s5] ss:$0 sm:$0xff]  ;;  %s267_s19 = scalar_lea.sflag [#allocation4], %s757_s23  ;;  %s562_s20 = sshra.s32 %s282_s14, 4  ;;  %s563_s20 = int_to_ptr.hbm [resolvable:$true] %s562_s20 }
  0x37   : > { %v257_v4 = vmul.f32 %v456_v1, %v252_v0  ;;  %s564_s13 = scalar_lea.hbm %s563_s20, 8  ;;  %s568_s24 = scalar_lea.hbm %s807_s4, 16 }
  0x38   : > { %p565_p1 = scmp.ne.s32.totalorder %s563_s20, %s564_s13  ;;  %p569_p10 = scmp.lt.s32.totalorder %s563_s20, %s807_s4 }
  0x39   : > { %v264_v6 = vadd.f32 %v263_v5, %v257_v4  ;;  %p570_p2 = scmp.lt.s32.totalorder %s568_s24, %s564_s13 }
  0x3a   : > { %p566_p4 = pnand %p565_p1, %p717_p3 }
  0x3b   : > { %265 = vst [vmem:[%s248_s21] sm:$0xff] %v264_v6  ;;  %p571_p11 = por %p570_p2, %p569_p10 }
  0x3c   : > { %p567_p9 = pneg %p566_p4 }
  0x3e   : > { %p572_p12 = pnand %p571_p11, %p567_p9 }
  0x40   : > { %575 = shalt.err (!%p572_p12)
}
  0x41   : > { %399 = dma.vmem_to_hbm [thread:$0]  (%p717_p3), %s280_s10, 128, %s282_s14, %s267_s19  }
  0x42 PF: > { %s293_s23 = sand.u32 1, %s610_s15   ;;  %p813_p13 = scmp.ge.s32.totalorder %s622_s18, 2 }
  0x43   : > { %s294_s29 = scalar_lea.sflag [#allocation4], %s293_s23 }
  0x44   : > { %p413_p0 = pnand %p813_p13, %p686_p6 }
  0x46   : > { %p414_p5 = pneg %p413_p0 }
  0x48   : > { %605 = dma.done.wait (%p414_p5), %s294_s29, 128  }
  0x49   : > { %607 = vsyncadd (%p414_p5), %s294_s29, 4294967168  ;;  %p16_p7 = scmp.ge.s32.totalorder %s707_s8, 4   ;;  %s814_s15 = smov %s614_s16 }
  0x4a   : > { %s815_s16 = smov %s618_s17  ;;  %s816_s17 = smov %s722_s12 }
  0x4b   : > { %s817_s18 = smov %s707_s8  ;;  %18 = sbr.rel (!%p16_p7) target bundleno = 5 (0x5), region = 91 }
  0x50   :  { %300 = vsyncpa [#allocation3], 1 }
  0x51   :  { %302 = vsyncpa [#allocation3 + $0x1], 1 }
  0x52   :  { %303 = vsyncpa [#allocation6], 1 }
  0x53   :  { %304 = vsyncpa [#allocation4], 1 }
  0x54   :  { %306 = vsyncpa [#allocation4 + $0x1], 1 }

</bundles_post_ra>
